<compile_context>
chip_gen: v6e
topology: v6e:2x2x1
jax: 0.10.0
libtpu: 0.0.40
codegen_flags: <defaults>
</compile_context>

<pallas_src>
import jax
import jax.numpy as jnp
from jax.experimental import pallas as pl
from jax.experimental.pallas import tpu as pltpu


# ---------------------------------------------------------------------------
# Kernel
# ---------------------------------------------------------------------------
def mlp_kernel(x_ref, w1_ref, b1_ref, w2_ref, b2_ref, w3_ref, b3_ref, w4_ref,
               o_ref):
    """One batch tile; activations carried as (features, batch_lanes)."""
    x_row = x_ref[...]                                        # (1, tm)

    # Layer 1 (in_features == 1): broadcast outer product on the VPU.
    h = jnp.tanh(w1_ref[...] * x_row + b1_ref[...])           # (H, tm)

    # Layers 2 / 3: MXU matmuls, batch stays on the 128-lane axis.
    h = jnp.tanh(
        jnp.dot(w2_ref[...], h, preferred_element_type=jnp.float32)
        + b2_ref[...])                                        # (H, tm)
    h = jnp.tanh(
        jnp.dot(w3_ref[...], h, preferred_element_type=jnp.float32)
        + b3_ref[...])                                        # (S, tm)

    # Output layer (no bias): (1, S) @ (S, tm) on the (otherwise idle) MXU.
    o_ref[...] = jnp.dot(w4_ref[...], h, preferred_element_type=jnp.float32)


# ---------------------------------------------------------------------------
# Generation-aware tiling helpers
# ---------------------------------------------------------------------------
def _tpu_topology():
    """(physical VMEM bytes per core, TensorCores per chip) with safe fallbacks."""
    vmem_bytes = 64 << 20            # conservative default (v7x per-TC VMEM)
    num_cores = 1
    try:
        info = pltpu.get_tpu_info()
        for name in ("vmem_capacity_bytes", "vmem_bytes", "vmem_size_bytes"):
            val = getattr(info, name, None)
            if val:
                vmem_bytes = int(val)
                break
        for name in ("num_cores", "core_count", "tensorcores_per_chip",
                     "num_tensorcores"):
            val = getattr(info, name, None)
            if val:
                num_cores = int(val)
                break
    except Exception:
        pass
    if num_cores == 1:
        try:
            kind = jax.devices()[0].device_kind.lower()
            if "7" in kind:          # v7x: 2 TensorCores per chip
                num_cores = 2
        except Exception:
            pass
    return vmem_bytes, num_cores


def _pick_batch_tile(n_pad128, hidden, sub, vmem_bytes, num_cores,
                     max_tile=16384):
    """Batch tile (lanes): multiple of 128, sized from a VMEM budget."""
    # Approx. live f32 bytes per lane (two generations of each activation set).
    per_lane_bytes = 4 * (2 * hidden + 2 * sub + 16)
    budget = vmem_bytes // 2                     # leave half of VMEM free
    cap = (budget // per_lane_bytes) // 128 * 128
    cap = max(128, min(cap, max_tile))

    if num_cores > 1:
        # >= 2 grid steps per core so both TensorCores stay busy / balanced.
        target_steps = 2 * num_cores
        tm = pl.cdiv(pl.cdiv(n_pad128, target_steps), 128) * 128
        return max(128, min(tm, cap))

    # Single TensorCore: one big step when it fits, otherwise the VMEM cap.
    return min(n_pad128, cap)


# ---------------------------------------------------------------------------
# Wrapper
# ---------------------------------------------------------------------------
def net_forward(x, params):
    """x: (N, 1) float32 -> (N, 1) float32 (matches PyTorch Net.forward)."""
    w1, b1, w2, b2, w3, b3, w4 = params
    N = int(x.shape[0])
    H = w1.shape[0]
    S = w3.shape[0]

    vmem_bytes, num_cores = _tpu_topology()
    n_pad128 = pl.cdiv(N, 128) * 128
    tm = _pick_batch_tile(n_pad128, H, S, vmem_bytes, num_cores)

    if tm >= N:
        tm = N               # single full-array block (exempt from 128 rule)
        n_tiles = 1
    else:
        n_tiles = pl.cdiv(N, tm)   # ragged last tile: Pallas masks the stores

    # Batch on the lane axis; no padding copy, no output-slice copy.
    x_row = x.reshape(1, N)

    # Constant block index -> fetched once, resident in VMEM across steps.
    resident = lambda arr: pl.BlockSpec(arr.shape, lambda i: (0, 0))

    # VMEM estimate -> explicit scoped-VMEM limit (matters on v7x: 64 MiB).
    def padded_bytes(a):
        r, c = a.shape
        return (pl.cdiv(r, 8) * 8) * (pl.cdiv(c, 128) * 128) * 4

    weights_bytes = sum(padded_bytes(a) for a in (w1, b1, w2, b2, w3, b3, w4))
    act_bytes = 4 * (2 * H + 2 * S + 16) * (pl.cdiv(tm, 128) * 128)
    est_bytes = act_bytes + 2 * weights_bytes + (2 << 20)
    vmem_limit = int(min(0.85 * vmem_bytes, max(est_bytes, 32 << 20)))

    out_row = pl.pallas_call(
        mlp_kernel,
        out_shape=jax.ShapeDtypeStruct((1, N), jnp.float32),
        grid_spec=pltpu.PrefetchScalarGridSpec(
            num_scalar_prefetch=0,
            grid=(n_tiles,),
            in_specs=[
                pl.BlockSpec((1, tm), lambda i: (0, i)),   # x tile, lane-dense
                resident(w1), resident(b1),
                resident(w2), resident(b2),
                resident(w3), resident(b3),
                resident(w4),
            ],
            out_specs=pl.BlockSpec((1, tm), lambda i: (0, i)),
        ),
        compiler_params=pltpu.CompilerParams(
            dimension_semantics=("parallel",),
            vmem_limit_bytes=vmem_limit),
    )(x_row, w1, b1, w2, b2, w3, b3, w4)

    return out_row.reshape(N, 1)


# ---------------------------------------------------------------------------
# Parameters & pure-JAX reference
# ---------------------------------------------------------------------------
def init_params(key, hidden_size, subspace_dim):
    """PyTorch-style uniform init; weights kept in (out, in) orientation."""
    ks = jax.random.split(key, 8)

    def linear(kw, kb, fan_in, fan_out, bias=True):
        bound = float(fan_in) ** -0.5
        w = jax.random.uniform(kw, (fan_out, fan_in), jnp.float32,
                               minval=-bound, maxval=bound)
        b = None
        if bias:
            # Bias stored as an (out, 1) column so it broadcasts over lanes.
            b = jax.random.uniform(kb, (fan_out, 1), jnp.float32,
                                   minval=-bound, maxval=bound)
        return w, b

    w1, b1 = linear(ks[0], ks[1], 1, hidden_size)
    w2, b2 = linear(ks[2], ks[3], hidden_size, hidden_size)
    w3, b3 = linear(ks[4], ks[5], hidden_size, subspace_dim)
    w4, _ = linear(ks[6], ks[7], subspace_dim, 1, bias=False)
    return (w1, b1, w2, b2, w3, b3, w4)       # w4 stays (1, subspace_dim)


def net_forward_ref(x, params):
    """Pure-JAX reference with PyTorch semantics: y = x @ W.T + b."""
    w1, b1, w2, b2, w3, b3, w4 = params
    h = jnp.tanh(x @ w1.T + b1.T)
    h = jnp.tanh(h @ w2.T + b2.T)
    h = jnp.tanh(h @ w3.T + b3.T)
    return h @ w4.T


if __name__ == "__main__":
    # Small shapes consistent with the module (hidden_size/subspace_dim scaled down).
    hidden_size = 32
    subspace_dim = 64
    batch = 256

    key = jax.random.PRNGKey(0)
    k_x, k_p = jax.random.split(key)

    x = jax.random.uniform(k_x, (batch, 1), jnp.float32)   # 1-D coordinates
    params = init_params(k_p, hidden_size, subspace_dim)

    out = jax.block_until_ready(net_forward(x, params))
    ref = net_forward_ref(x, params)

    assert out.shape == (batch, 1)
    assert jnp.allclose(out, ref, atol=1e-5, rtol=1e-5)

    print("KERNEL_OK")
</pallas_src>

<mosaic_0001>
module attributes {stable_mosaic.version = 11 : i64} {
  func.func @mlp_kernel(%arg0: i32, %arg1: memref<1x256xf32, #tpu.memory_space<vmem>>, %arg2: memref<32x1xf32, #tpu.memory_space<vmem>>, %arg3: memref<32x1xf32, #tpu.memory_space<vmem>>, %arg4: memref<32x32xf32, #tpu.memory_space<vmem>>, %arg5: memref<32x1xf32, #tpu.memory_space<vmem>>, %arg6: memref<64x32xf32, #tpu.memory_space<vmem>>, %arg7: memref<64x1xf32, #tpu.memory_space<vmem>>, %arg8: memref<1x64xf32, #tpu.memory_space<vmem>>, %arg9: memref<1x256xf32, #tpu.memory_space<vmem>>) attributes {dimension_semantics = [#tpu.dimension_semantics<parallel>], iteration_bounds = array<i64: 1>, scalar_prefetch = 0 : i64, scratch_operands = 0 : i64, tpu.core_type = #tpu.core_type<tc>, window_params = [{transform_indices = @transform_0, window_bounds = array<i64: 1, 256>}, {pipeline_mode = #tpu.pipeline_mode<synchronous>, transform_indices = @transform_1, window_bounds = array<i64: 32, 1>}, {pipeline_mode = #tpu.pipeline_mode<synchronous>, transform_indices = @transform_2, window_bounds = array<i64: 32, 1>}, {pipeline_mode = #tpu.pipeline_mode<synchronous>, transform_indices = @transform_3, window_bounds = array<i64: 32, 32>}, {pipeline_mode = #tpu.pipeline_mode<synchronous>, transform_indices = @transform_4, window_bounds = array<i64: 32, 1>}, {pipeline_mode = #tpu.pipeline_mode<synchronous>, transform_indices = @transform_5, window_bounds = array<i64: 64, 32>}, {pipeline_mode = #tpu.pipeline_mode<synchronous>, transform_indices = @transform_6, window_bounds = array<i64: 64, 1>}, {pipeline_mode = #tpu.pipeline_mode<synchronous>, transform_indices = @transform_7, window_bounds = array<i64: 1, 64>}, {transform_indices = @transform_8, window_bounds = array<i64: 1, 256>}]} {
    %c0 = arith.constant 0 : index
    %c0_0 = arith.constant 0 : index
    %0 = vector.load %arg1[%c0, %c0_0] : memref<1x256xf32, #tpu.memory_space<vmem>>, vector<1x256xf32>
    %c0_1 = arith.constant 0 : index
    %c0_2 = arith.constant 0 : index
    %1 = vector.load %arg2[%c0_1, %c0_2] : memref<32x1xf32, #tpu.memory_space<vmem>>, vector<32x1xf32>
    %2 = vector.broadcast %1 : vector<32x1xf32> to vector<32x256xf32>
    %3 = vector.broadcast %0 : vector<1x256xf32> to vector<32x256xf32>
    %4 = arith.mulf %2, %3 : vector<32x256xf32>
    %c0_3 = arith.constant 0 : index
    %c0_4 = arith.constant 0 : index
    %5 = vector.load %arg3[%c0_3, %c0_4] : memref<32x1xf32, #tpu.memory_space<vmem>>, vector<32x1xf32>
    %6 = vector.broadcast %5 : vector<32x1xf32> to vector<32x256xf32>
    %7 = arith.addf %4, %6 : vector<32x256xf32>
    %8 = math.tanh %7 : vector<32x256xf32>
    %c0_5 = arith.constant 0 : index
    %c0_6 = arith.constant 0 : index
    %9 = vector.load %arg4[%c0_5, %c0_6] : memref<32x32xf32, #tpu.memory_space<vmem>>, vector<32x32xf32>
    %cst = arith.constant dense<0.000000e+00> : vector<32x256xf32>
    %10 = tpu.matmul %9, %8, %cst {dimension_numbers = #tpu.dot_dimension_numbers<[1], [0], [0], [1], [0, 0, 1, 1], [], []>} : vector<32x32xf32>, vector<32x256xf32>, vector<32x256xf32> -> vector<32x256xf32>
    %c0_7 = arith.constant 0 : index
    %c0_8 = arith.constant 0 : index
    %11 = vector.load %arg5[%c0_7, %c0_8] : memref<32x1xf32, #tpu.memory_space<vmem>>, vector<32x1xf32>
    %12 = vector.broadcast %11 : vector<32x1xf32> to vector<32x256xf32>
    %13 = arith.addf %10, %12 : vector<32x256xf32>
    %14 = math.tanh %13 : vector<32x256xf32>
    %c0_9 = arith.constant 0 : index
    %c0_10 = arith.constant 0 : index
    %15 = vector.load %arg6[%c0_9, %c0_10] : memref<64x32xf32, #tpu.memory_space<vmem>>, vector<64x32xf32>
    %cst_11 = arith.constant dense<0.000000e+00> : vector<64x256xf32>
    %16 = tpu.matmul %15, %14, %cst_11 {dimension_numbers = #tpu.dot_dimension_numbers<[1], [0], [0], [1], [0, 0, 1, 1], [], []>} : vector<64x32xf32>, vector<32x256xf32>, vector<64x256xf32> -> vector<64x256xf32>
    %c0_12 = arith.constant 0 : index
    %c0_13 = arith.constant 0 : index
    %17 = vector.load %arg7[%c0_12, %c0_13] : memref<64x1xf32, #tpu.memory_space<vmem>>, vector<64x1xf32>
    %18 = vector.broadcast %17 : vector<64x1xf32> to vector<64x256xf32>
    %19 = arith.addf %16, %18 : vector<64x256xf32>
    %20 = math.tanh %19 : vector<64x256xf32>
    %c0_14 = arith.constant 0 : index
    %c0_15 = arith.constant 0 : index
    %21 = vector.load %arg8[%c0_14, %c0_15] : memref<1x64xf32, #tpu.memory_space<vmem>>, vector<1x64xf32>
    %cst_16 = arith.constant dense<0.000000e+00> : vector<1x256xf32>
    %22 = tpu.matmul %21, %20, %cst_16 {dimension_numbers = #tpu.dot_dimension_numbers<[1], [0], [0], [1], [0, 0, 1, 1], [], []>} : vector<1x64xf32>, vector<64x256xf32>, vector<1x256xf32> -> vector<1x256xf32>
    %c0_17 = arith.constant 0 : index
    %c0_18 = arith.constant 0 : index
    %23 = vector.load %arg9[%c0_17, %c0_18] : memref<1x256xf32, #tpu.memory_space<vmem>>, vector<1x256xf32>
    tpu.vector_store %arg9[%c0_17, %c0_18], %22 {strides = array<i32>} : memref<1x256xf32, #tpu.memory_space<vmem>>, vector<1x256xf32>,
    return
  }
  func.func @transform_0(%arg0: i32) -> (i32, i32) {
    %c0_i32 = arith.constant 0 : i32
    %c0_i32_0 = arith.constant 0 : i32
    return %c0_i32, %arg0 : i32, i32
  }
  func.func @transform_1(%arg0: i32) -> (i32, i32) {
    %c0_i32 = arith.constant 0 : i32
    %c0_i32_0 = arith.constant 0 : i32
    %c0_i32_1 = arith.constant 0 : i32
    return %c0_i32, %c0_i32_0 : i32, i32
  }
  func.func @transform_2(%arg0: i32) -> (i32, i32) {
    %c0_i32 = arith.constant 0 : i32
    %c0_i32_0 = arith.constant 0 : i32
    %c0_i32_1 = arith.constant 0 : i32
    return %c0_i32, %c0_i32_0 : i32, i32
  }
  func.func @transform_3(%arg0: i32) -> (i32, i32) {
    %c0_i32 = arith.constant 0 : i32
    %c0_i32_0 = arith.constant 0 : i32
    %c0_i32_1 = arith.constant 0 : i32
    return %c0_i32, %c0_i32_0 : i32, i32
  }
  func.func @transform_4(%arg0: i32) -> (i32, i32) {
    %c0_i32 = arith.constant 0 : i32
    %c0_i32_0 = arith.constant 0 : i32
    %c0_i32_1 = arith.constant 0 : i32
    return %c0_i32, %c0_i32_0 : i32, i32
  }
  func.func @transform_5(%arg0: i32) -> (i32, i32) {
    %c0_i32 = arith.constant 0 : i32
    %c0_i32_0 = arith.constant 0 : i32
    %c0_i32_1 = arith.constant 0 : i32
    return %c0_i32, %c0_i32_0 : i32, i32
  }
  func.func @transform_6(%arg0: i32) -> (i32, i32) {
    %c0_i32 = arith.constant 0 : i32
    %c0_i32_0 = arith.constant 0 : i32
    %c0_i32_1 = arith.constant 0 : i32
    return %c0_i32, %c0_i32_0 : i32, i32
  }
  func.func @transform_7(%arg0: i32) -> (i32, i32) {
    %c0_i32 = arith.constant 0 : i32
    %c0_i32_0 = arith.constant 0 : i32
    %c0_i32_1 = arith.constant 0 : i32
    return %c0_i32, %c0_i32_0 : i32, i32
  }
  func.func @transform_8(%arg0: i32) -> (i32, i32) {
    %c0_i32 = arith.constant 0 : i32
    %c0_i32_0 = arith.constant 0 : i32
    return %c0_i32, %arg0 : i32, i32
  }
}

</mosaic_0001>

<bundles_post_ra>
// kernel: tpu_custom_call.1
= control target key start
LH: loop header
LB: loop body
LE: loop exit
PB: predicated region body
PF: predicated region fallthrough
CT: control target
= control target key end

     0   :  { %v679_v2 = vmov 0   ;;  %s865_s0 = inlined_call_operand.vmem [shape: f32[1,256], index: 0, kind: input, shape index: {}]   ;;  %s866_s1 = inlined_call_operand.vmem [shape: f32[32,1], index: 1, kind: input, shape index: {}]   ;;  %s867_s2 = inlined_call_operand.vmem [shape: f32[32,1], index: 2, kind: input, shape index: {}]   ;;  %s868_s3 = inlined_call_operand.vmem [shape: f32[32,32], index: 3, kind: input, shape index: {}]   ;;  %s869_s4 = inlined_call_operand.vmem [shape: f32[32,1], index: 4, kind: input, shape index: {}]   ;;  %s870_s5 = inlined_call_operand.vmem [shape: f32[64,32], index: 5, kind: input, shape index: {}]   ;;  %s871_s6 = inlined_call_operand.vmem [shape: f32[64,1], index: 6, kind: input, shape index: {}]   ;;  %s872_s7 = inlined_call_operand.vmem [shape: f32[1,64], index: 7, kind: input, shape index: {}]   ;;  %s873_s8 = inlined_call_operand.hbm [shape: f32[1,256], index: 8, kind: output, shape index: {}]  }
   0x1   :  { %v77_v0 = vld [vmem:[%s867_s2 + $0x18] sm:$0xff]  ;;  %592 = vset.pattern.permute.xlu1 %v679_v2  ;;  %591 = vset.pattern.permute.xlu0 %v679_v2  ;;  %v33_v3 = vld [vmem:[%s866_s1 + $0x10] sm:$0xff]  ;;  %v32_v4 = vld [vmem:[%s866_s1 + $0x8] sm:$0xff] }
   0x2   :  { %v34_v1 = vld [vmem:[%s866_s1 + $0x18] sm:$0xff]  ;;  %95 = vperm.xlu1 %592, %v77_v0   ;;  %v76_v5 = vld [vmem:[%s867_s2 + $0x10] sm:$0xff]  ;;  %v31_v6 = vld [vmem:[%s866_s1] sm:$0xff] }
   0x3   :  { %52 = vperm.xlu0 %591, %v34_v1  }
   0x6   :  { %42 = vperm.xlu1 %592, %v32_v4  }
   0x7   :  { %47 = vperm.xlu0 %591, %v33_v3  }
   0x8   :  { %13 = vsyncpa [#allocation3], 0  ;;  %v75_v7 = vld [vmem:[%s867_s2 + $0x8] sm:$0xff]  ;;  %v74_v8 = vld [vmem:[%s867_s2] sm:$0xff]  ;;  %v680_v19 = vmov 0.0   ;;  %v56_v22 = vlaneseq  ;;  %vm142_vm0 = vcmask 261120  }
   0x9   :  { %v121_v9 = vld [vmem:[%s869_s4 + $0x18] sm:$0xff]  ;;  %v120_v10 = vld [vmem:[%s869_s4 + $0x10] sm:$0xff]  ;;  %v119_v11 = vld [vmem:[%s869_s4 + $0x8] sm:$0xff]  ;;  %219 = vmatprep.mubr.f32.mxu0 %v680_v19  ;;  %396 = vmatprep.mubr.f32.mxu1 %v680_v19  ;;  %vm462_vm1 = vcmask 523264   ;;  %s682_s19 = smov [#allocation2]  }
   0xa   :  { %37 = vperm.xlu1 %592, %v31_v6   ;;  %v118_v12 = vld [vmem:[%s869_s4] sm:$0xff]  ;;  %v267_v13 = vld [vmem:[%s871_s6 + $0x38] sm:$0xff]  ;;  %v266_v14 = vld [vmem:[%s871_s6 + $0x30] sm:$0xff]  ;;  %v791_v23 = vshrl.u32 %v56_v22, 7  ;;  %s566_s20 = sshll.u32 %s682_s19, 4  ;;  %vm557_vm2 = vcmp.lt.s32.totalorder %v56_v22, 256  ;;  %s567_s20 = int_to_ptr.vmem [resolvable:$true] %s566_s20 }
   0xb   :  { %90 = vperm.xlu0 %591, %v76_v5   ;;  %v265_v15 = vld [vmem:[%s871_s6 + $0x28] sm:$0xff]  ;;  %v264_v16 = vld [vmem:[%s871_s6 + $0x20] sm:$0xff]  ;;  %v263_v17 = vld [vmem:[%s871_s6 + $0x18] sm:$0xff]  ;;  %p662_p1 = scmp.lt.s32.totalorder %s567_s20, %s567_s20 }
   0xc   :  { %v262_v18 = vld [vmem:[%s871_s6 + $0x10] sm:$0xff]  ;;  %v261_v20 = vld [vmem:[%s871_s6 + $0x8] sm:$0xff]  ;;  %v260_v21 = vld [vmem:[%s871_s6] sm:$0xff]  ;;  %v58_v24 = vsub.s32 0, %v791_v23  ;;  %v62_v25 = vsub.s32 1, %v791_v23 }
   0xd   :  { %v30_v26 = vld [vmem:[%s865_s0] sm:$0x3]  ;;  %v115_v62 = vld [vmem:[%s868_s3 + $0x8] sm:$0xff]  ;;  %v116_v63 = vld [vmem:[%s868_s3 + $0x10] sm:$0xff] }
   0xe   :  { %80 = vperm.xlu1 %592, %v74_v8   ;;  %v59_v27 = vrot.slane %v30_v26, %v58_v24  ;;  %v63_v28 = vrot.slane %v30_v26, %v62_v25  ;;  %v114_v60 = vld [vmem:[%s868_s3] sm:$0xff]  ;;  %v117_v0 = vld [vmem:[%s868_s3 + $0x18] sm:$0xff] }
   0xf   :  { %85 = vperm.xlu0 %591, %v75_v7  }
  0x12   :  { %134 = vperm.xlu1 %592, %v120_v10  }
  0x13   :  { %139 = vperm.xlu0 %591, %v121_v9  }
  0x16   :  { %124 = vperm.xlu1 %592, %v118_v12  }
  0x17   :  { %129 = vperm.xlu0 %591, %v119_v11  }
  0x1a   :  { %300 = vperm.xlu1 %592, %v266_v14  }
  0x1b   :  { %305 = vperm.xlu0 %591, %v267_v13  }
  0x1e   :  { %290 = vperm.xlu1 %592, %v264_v16  }
  0x1f   :  { %295 = vperm.xlu0 %591, %v265_v15  }
  0x22   :  { %280 = vperm.xlu1 %592, %v262_v18  }
  0x23   :  { %285 = vperm.xlu0 %591, %v263_v17  }
  0x26   :  { %270 = vperm.xlu1 %592, %v260_v21  }
  0x27   :  { %275 = vperm.xlu0 %591, %v261_v20  }
  0x7d   :  { %v96_v29 = vpop.permute.xlu1 %95 }
  0x7e   :  { %v53_v30 = vpop.permute.xlu0 %52 }
  0x7f   :  { %v72_v31 = vmul.f32 %v59_v27, %v53_v30  ;;  %v73_v32 = vmul.f32 %v63_v28, %v53_v30 }
  0x81   :  { %v104_v33 = vadd.f32 %v96_v29, %v72_v31  ;;  %v105_v34 = vadd.f32 %v96_v29, %v73_v32  ;;  %v43_v36 = vpop.permute.xlu1 %42  ;;  %v252_v31 = vld [vmem:[%s870_s5] sm:$0xff] }
  0x82   :  { %v48_v35 = vpop.permute.xlu0 %47  ;;  %v68_v43 = vmul.f32 %v59_v27, %v43_v36  ;;  %v69_v44 = vmul.f32 %v63_v28, %v43_v36  ;;  %v256_v36 = vld [vmem:[%s870_s5 + $0x20] sm:$0xff] }
  0x83   :  { %593 = vtanh.f32 %v104_v33  ;;  %v70_v37 = vmul.f32 %v59_v27, %v48_v35  ;;  %v71_v38 = vmul.f32 %v63_v28, %v48_v35  ;;  %v253_v33 = vld [vmem:[%s870_s5 + $0x8] sm:$0xff]  ;;  %v255_v35 = vld [vmem:[%s870_s5 + $0x18] sm:$0xff] }
  0x84   :  { %595 = vtanh.f32 %v105_v34  ;;  %v254_v34 = vld [vmem:[%s870_s5 + $0x10] sm:$0xff] }
  0x85   :  { %v38_v40 = vpop.permute.xlu1 %37 }
  0x86   :  { %v91_v39 = vpop.permute.xlu0 %90  ;;  %v67_v45 = vmul.f32 %v63_v28, %v38_v40  ;;  %v66_v48 = vmul.f32 %v59_v27, %v38_v40 }
  0x87   :  { %v102_v41 = vadd.f32 %v91_v39, %v70_v37  ;;  %v103_v42 = vadd.f32 %v91_v39, %v71_v38  ;;  %v257_v37 = vld [vmem:[%s870_s5 + $0x28] sm:$0xff]  ;;  %v258_v38 = vld [vmem:[%s870_s5 + $0x30] sm:$0xff]  ;;  %v259_v39 = vld [vmem:[%s870_s5 + $0x38] sm:$0xff] }
  0x89   :  { %597 = vtanh.f32 %v102_v41  ;;  %v81_v47 = vpop.permute.xlu1 %80 }
  0x8a   :  { %599 = vtanh.f32 %v103_v42  ;;  %v86_v46 = vpop.permute.xlu0 %85  ;;  %v99_v51 = vadd.f32 %v81_v47, %v67_v45  ;;  %v98_v52 = vadd.f32 %v81_v47, %v66_v48 }
  0x8b   :  { %v100_v49 = vadd.f32 %v86_v46, %v68_v43  ;;  %v101_v50 = vadd.f32 %v86_v46, %v69_v44 }
  0x8d   :  { %601 = vtanh.f32 %v100_v49  ;;  %v135_v8 = vpop.permute.xlu1 %134 }
  0x8e   :  { %603 = vtanh.f32 %v101_v50  ;;  %v140_v6 = vpop.permute.xlu0 %139 }
  0x8f   :  { %605 = vtanh.f32 %v99_v51 }
  0x90   :  { %v594_v53 = vpop.eup %593  ;;  %607 = vtanh.f32 %v98_v52 }
  0x91   :  { %v596_v54 = vpop.eup %595  ;;  %v125_v17 = vpop.permute.xlu1 %124 }
  0x92   :  { %179 = vmatprep.subr.mxu0 %v596_v54  ;;  %v130_v14 = vpop.permute.xlu0 %129 }
  0x93   :  { %180 = vmatpush1.msra.mxu0 %v594_v53 }
  0x96   :  { %v598_v55 = vpop.eup %597  ;;  %v306_v51 = vpop.permute.xlu0 %305 }
  0x97   :  { %v600_v56 = vpop.eup %599 }
  0x98   :  { %181 = vmatprep.subr.mxu0 %v600_v56 }
  0x99   :  { %182 = vmatpush1.msra.mxu0 %v598_v55 }
  0x9a   :  { %v602_v57 = vpop.eup %601  ;;  %v296_v55 = vpop.permute.xlu0 %295 }
  0x9b   :  { %v604_v58 = vpop.eup %603 }
  0x9c   :  { %183 = vmatprep.subr.mxu0 %v604_v58  ;;  %v606_v59 = vpop.eup %605 }
  0x9d   :  { %184 = vmatpush1.msra.mxu0 %v602_v57  ;;  %v608_v61 = vpop.eup %607 }
  0x9e   :  { %185 = vmatprep.subr.mxu0 %v606_v59 }
  0x9f   :  { %186 = vmatpush1.msra.mxu0 %v608_v61 }
  0xa0   :  { %574 = vmatmul.mubr.msk.f32.vlgmr.msra.gmra.mxu0 %vm142_vm0, %v114_v60 }
  0xa1   :  { %225 = vmatprep.mubr.f32.mxu0 %v680_v19 }
  0xa4   :  { %575 = vmatmul.mubr.msk.f32.gmra.mxu0 %vm142_vm0, %v115_v62 }
  0xa5   :  { %231 = vmatprep.mubr.f32.mxu0 %v680_v19 }
  0xa8   :  { %576 = vmatmul.mubr.msk.f32.gmra.mxu0 %vm142_vm0, %v116_v63 }
  0xa9   :  { %237 = vmatprep.mubr.f32.mxu0 %v680_v19 }
  0xac   :  { %577 = vmatmul.mubr.msk.f32.gmra.mxu0 %vm142_vm0, %v117_v0  ;;  %v286_v0 = vpop.permute.xlu0 %285 }
  0xad   :  { %530 = vmatprep.mubr.f32.mxu0 %v680_v19 }
 0x160   :  { %v221_v1 = vpop.f32.mrf.mxu0 }
 0x161   :  { %v222_v21 = vadd.f32 %v221_v1, %v125_v17 }
 0x162   :  { %v223_v2 = vpop.f32.mrf.mxu0 }
 0x163   :  { %v224_v20 = vadd.f32 %v223_v2, %v125_v17 }
 0x164   :  { %v227_v3 = vpop.f32.mrf.mxu0 }
 0x165   :  { %v228_v18 = vadd.f32 %v227_v3, %v130_v14 }
 0x166   :  { %v229_v4 = vpop.f32.mrf.mxu0 }
 0x167   :  { %v230_v16 = vadd.f32 %v229_v4, %v130_v14 }
 0x168   :  { %v233_v5 = vpop.f32.mrf.mxu0 }
 0x169   :  { %v234_v15 = vadd.f32 %v233_v5, %v135_v8 }
 0x16a   :  { %v235_v7 = vpop.f32.mrf.mxu0 }
 0x16b   :  { %v236_v12 = vadd.f32 %v235_v7, %v135_v8  ;;  %v276_v8 = vpop.permute.xlu0 %275 }
 0x16c   :  { %v239_v9 = vpop.f32.mrf.mxu0 }
 0x16d   :  { %v240_v10 = vadd.f32 %v239_v9, %v140_v6 }
 0x16e   :  { %v241_v11 = vpop.f32.mrf.mxu0 }
 0x16f   :  { %v242_v13 = vadd.f32 %v241_v11, %v140_v6 }
 0x171   :  { %609 = vtanh.f32 %v242_v13 }
 0x172   :  { %611 = vtanh.f32 %v240_v10 }
 0x173   :  { %613 = vtanh.f32 %v236_v12 }
 0x174   :  { %615 = vtanh.f32 %v234_v15 }
 0x175   :  { %617 = vtanh.f32 %v230_v16 }
 0x176   :  { %619 = vtanh.f32 %v228_v18 }
 0x177   :  { %621 = vtanh.f32 %v224_v20 }
 0x178   :  { %623 = vtanh.f32 %v222_v21 }
 0x17e   :  { %v610_v24 = vpop.eup %609 }
 0x17f   :  { %v612_v25 = vpop.eup %611  ;;  %356 = vmatprep.subr.mxu1 %v610_v24 }
 0x180   :  { %v614_v26 = vpop.eup %613  ;;  %357 = vmatpush1.msra.mxu1 %v612_v25 }
 0x181   :  { %v616_v27 = vpop.eup %615  ;;  %358 = vmatprep.subr.mxu1 %v614_v26 }
 0x182   :  { %v618_v28 = vpop.eup %617  ;;  %359 = vmatpush1.msra.mxu1 %v616_v27 }
 0x183   :  { %v620_v29 = vpop.eup %619  ;;  %360 = vmatprep.subr.mxu1 %v618_v28 }
 0x184   :  { %v622_v30 = vpop.eup %621  ;;  %361 = vmatpush1.msra.mxu1 %v620_v29 }
 0x185   :  { %v624_v32 = vpop.eup %623  ;;  %362 = vmatprep.subr.mxu1 %v622_v30 }
 0x186   :  { %363 = vmatpush1.msra.mxu1 %v624_v32 }
 0x187   :  { %578 = vmatmul.mubr.msk.f32.vlgmr.msra.gmra.mxu1 %vm142_vm0, %v252_v31 }
 0x188   :  { %402 = vmatprep.mubr.f32.mxu1 %v680_v19 }
 0x18b   :  { %579 = vmatmul.mubr.msk.f32.gmra.mxu1 %vm142_vm0, %v253_v33  ;;  %v461_v33 = vld [vmem:[%s872_s7] sm:$0x1]  ;;  %s657_s7 = scalar_lea.vmem %s567_s20, 32 }
 0x18c   :  { %408 = vmatprep.mubr.f32.mxu1 %v680_v19  ;;  %p658_p0 = scmp.ne.s32.totalorder %s567_s20, %s657_s7  ;;  %p663_p2 = scmp.lt.s32.totalorder %s657_s7, %s657_s7 }
 0x18e   :  { %p664_p3 = por %p663_p2, %p662_p1 }
 0x18f   :  { %580 = vmatmul.mubr.msk.f32.gmra.mxu1 %vm142_vm0, %v254_v34 }
 0x190   :  { %414 = vmatprep.mubr.f32.mxu1 %v680_v19  ;;  %p665_p4 = pnand %p664_p3, %p658_p0 }
 0x193   :  { %581 = vmatmul.mubr.msk.f32.gmra.mxu1 %vm142_vm0, %v255_v35  ;;  %v681_v35 = vmov 1966171168  }
 0x194   :  { %420 = vmatprep.mubr.f32.mxu1 %v680_v19 }
 0x197   :  { %582 = vmatmul.mubr.msk.f32.gmra.mxu1 %vm142_vm0, %v256_v36  ;;  %v541_v36 = vunpack.c.l.s4 %v681_v35 }
 0x198   :  { %426 = vmatprep.mubr.f32.mxu1 %v680_v19 }
 0x19b   :  { %583 = vmatmul.mubr.msk.f32.gmra.mxu1 %vm142_vm0, %v257_v37  ;;  %v542_v37 = vunpack.c.0.s8 %v541_v36 }
 0x19c   :  { %432 = vmatprep.mubr.f32.mxu1 %v680_v19 }
 0x19f   :  { %584 = vmatmul.mubr.msk.f32.gmra.mxu1 %vm142_vm0, %v258_v38 }
 0x1a0   :  { %438 = vmatprep.mubr.f32.mxu1 %v680_v19  ;;  %v301_v19 = vpop.permute.xlu1 %300 }
 0x1a3   :  { %585 = vmatmul.mubr.msk.f32.gmra.mxu1 %vm142_vm0, %v259_v39  ;;  %v545_v39 = vsub.s32 %v542_v37, %v791_v23 }
 0x1a4   :  { %v291_v57 = vpop.permute.xlu1 %290 }
 0x1a8   :  { %v281_v3 = vpop.permute.xlu1 %280 }
 0x1ac   :  { %v271_v11 = vpop.permute.xlu1 %270 }
 0x247   :  { %v398_v40 = vpop.f32.mrf.mxu1 }
 0x248   :  { %v399_v14 = vadd.f32 %v398_v40, %v271_v11 }
 0x249   :  { %v400_v41 = vpop.f32.mrf.mxu1 }
 0x24a   :  { %v401_v13 = vadd.f32 %v400_v41, %v271_v11 }
 0x24b   :  { %v404_v42 = vpop.f32.mrf.mxu1 }
 0x24c   :  { %v405_v12 = vadd.f32 %v404_v42, %v276_v8 }
 0x24d   :  { %v406_v43 = vpop.f32.mrf.mxu1 }
 0x24e   :  { %v407_v10 = vadd.f32 %v406_v43, %v276_v8 }
 0x24f   :  { %v410_v44 = vpop.f32.mrf.mxu1 }
 0x250   :  { %v411_v9 = vadd.f32 %v410_v44, %v281_v3 }
 0x251   :  { %v412_v45 = vpop.f32.mrf.mxu1 }
 0x252   :  { %v413_v7 = vadd.f32 %v412_v45, %v281_v3 }
 0x253   :  { %v416_v46 = vpop.f32.mrf.mxu1 }
 0x254   :  { %v417_v6 = vadd.f32 %v416_v46, %v286_v0 }
 0x255   :  { %v418_v47 = vpop.f32.mrf.mxu1 }
 0x256   :  { %v419_v5 = vadd.f32 %v418_v47, %v286_v0 }
 0x257   :  { %v422_v48 = vpop.f32.mrf.mxu1 }
 0x258   :  { %v423_v4 = vadd.f32 %v422_v48, %v291_v57 }
 0x259   :  { %v424_v49 = vpop.f32.mrf.mxu1 }
 0x25a   :  { %v425_v2 = vadd.f32 %v424_v49, %v291_v57 }
 0x25b   :  { %v428_v50 = vpop.f32.mrf.mxu1 }
 0x25c   :  { %v429_v1 = vadd.f32 %v428_v50, %v296_v55 }
 0x25d   :  { %v430_v52 = vpop.f32.mrf.mxu1 }
 0x25e   :  { %v431_v63 = vadd.f32 %v430_v52, %v296_v55 }
 0x25f   :  { %v434_v53 = vpop.f32.mrf.mxu1 }
 0x260   :  { %v435_v62 = vadd.f32 %v434_v53, %v301_v19 }
 0x261   :  { %v436_v54 = vpop.f32.mrf.mxu1 }
 0x262   :  { %v437_v60 = vadd.f32 %v436_v54, %v301_v19 }
 0x263   :  { %v440_v56 = vpop.f32.mrf.mxu1 }
 0x264   :  { %v441_v58 = vadd.f32 %v440_v56, %v306_v51 }
 0x265   :  { %v442_v59 = vpop.f32.mrf.mxu1 }
 0x266   :  { %v443_v61 = vadd.f32 %v442_v59, %v306_v51 }
 0x268   :  { %625 = vtanh.f32 %v443_v61 }
 0x269   :  { %627 = vtanh.f32 %v441_v58 }
 0x26a   :  { %629 = vtanh.f32 %v437_v60 }
 0x26b   :  { %631 = vtanh.f32 %v435_v62 }
 0x26c   :  { %633 = vtanh.f32 %v431_v63 }
 0x26d   :  { %635 = vtanh.f32 %v429_v1 }
 0x26e   :  { %637 = vtanh.f32 %v425_v2 }
 0x26f   :  { %639 = vtanh.f32 %v423_v4 }
 0x270   :  { %641 = vtanh.f32 %v419_v5 }
 0x271   :  { %643 = vtanh.f32 %v417_v6 }
 0x272   :  { %645 = vtanh.f32 %v413_v7 }
 0x273   :  { %647 = vtanh.f32 %v411_v9 }
 0x274   :  { %649 = vtanh.f32 %v407_v10 }
 0x275   :  { %v626_v15 = vpop.eup %625  ;;  %651 = vtanh.f32 %v405_v12 }
 0x276   :  { %v628_v16 = vpop.eup %627  ;;  %653 = vtanh.f32 %v401_v13  ;;  %482 = vmatprep.subr.mxu0 %v626_v15 }
 0x277   :  { %v630_v17 = vpop.eup %629  ;;  %655 = vtanh.f32 %v399_v14  ;;  %483 = vmatpush1.msra.mxu0 %v628_v16 }
 0x278   :  { %v632_v18 = vpop.eup %631  ;;  %484 = vmatprep.subr.mxu0 %v630_v17 }
 0x279   :  { %v634_v20 = vpop.eup %633  ;;  %485 = vmatpush1.msra.mxu0 %v632_v18 }
 0x27a   :  { %v636_v21 = vpop.eup %635  ;;  %486 = vmatprep.subr.mxu0 %v634_v20 }
 0x27b   :  { %v638_v24 = vpop.eup %637  ;;  %487 = vmatpush1.msra.mxu0 %v636_v21 }
 0x27c   :  { %v640_v25 = vpop.eup %639  ;;  %488 = vmatprep.subr.mxu0 %v638_v24 }
 0x27d   :  { %v642_v26 = vpop.eup %641  ;;  %489 = vmatpush1.msra.mxu0 %v640_v25 }
 0x27e   :  { %v644_v27 = vpop.eup %643  ;;  %490 = vmatprep.subr.mxu0 %v642_v26 }
 0x27f   :  { %v646_v28 = vpop.eup %645  ;;  %491 = vmatpush1.msra.mxu0 %v644_v27 }
 0x280   :  { %v648_v29 = vpop.eup %647  ;;  %492 = vmatprep.subr.mxu0 %v646_v28 }
 0x281   :  { %v650_v30 = vpop.eup %649  ;;  %493 = vmatpush1.msra.mxu0 %v648_v29 }
 0x282   :  { %v652_v31 = vpop.eup %651  ;;  %494 = vmatprep.subr.mxu0 %v650_v30 }
 0x283   :  { %v654_v32 = vpop.eup %653  ;;  %495 = vmatpush1.msra.mxu0 %v652_v31 }
 0x284   :  { %v656_v34 = vpop.eup %655  ;;  %496 = vmatprep.subr.mxu0 %v654_v32 }
 0x285   :  { %497 = vmatpush1.msra.mxu0 %v656_v34 }
 0x286   :  { %586 = vmatmul.mubr.msk.f32.vlgmr.msra.gmra.mxu0 %vm462_vm1, %v461_v33 }
 0x346   :  { %v532_v38 = vpop.f32.mrf.mxu0 }
 0x348   :  { %v534_v40 = vpop.f32.mrf.mxu0 }
 0x349   :  { %v539_v41 = vcombine.low %v532_v38, %v534_v40 }
 0x34b   :  { %v546_v42 = vrot.slane %v539_v41, %v545_v39 }
 0x34d   :  { %v553_v43 = vrot.slane %v546_v42, %v545_v39 }
 0x34f   :  { %559 = vst.msk [vmem:[#allocation2] sm:$0x3] %vm557_vm2, %v553_v43 }
 0x350   :  { %668 = shalt.err (!%p665_p4)
}
 0x351   :  { %569 = dma.vmem_to_hbm [thread:$0]  %s567_s20, 32, %s873_s8, [#allocation3]  }
 0x352   :  { %677 = dma.done.wait [#allocation3], 32  }
 0x353   :  { %678 = vsyncadd [#allocation3], 4294967264 }
 0x354   :  { %573 = vsyncpa [#allocation3], 1 }

</bundles_post_ra>
